<compile_context>
chip_gen: v5e
topology: v5e:2x2
jax: 0.10.0
libtpu: 0.0.40
codegen_flags: <defaults>
</compile_context>

<pallas_src>
import functools

import jax
import jax.numpy as jnp
from jax.experimental import pallas as pl
from jax.experimental.pallas import tpu as pltpu


def _round_up(x, m):
    return ((x + m - 1) // m) * m


def mlp_kernel(x_ref, w_in_ref, b_in_ref, w_h_ref, b_h_ref,
               w_out_ref, b_out_ref, o_ref, *, n_hidden_layers):
    # ---- input layer: Linear + ReLU (bf16 MXU inputs, f32 accum/epilogue) ----
    x = x_ref[...].astype(jnp.bfloat16)
    h = jnp.dot(x, w_in_ref[...], preferred_element_type=jnp.float32)
    h = jnp.maximum(h + b_in_ref[...], 0.0)

    # ---- hidden layers: the SAME Linear+ReLU applied n_hidden_layers times ----
    # Shared weight loaded once, shared bias broadcast once (hoisted: JAX does
    # not CSE broadcast_in_dim), chain fully unrolled.
    w_h = w_h_ref[...]
    b_h = jnp.broadcast_to(b_h_ref[...], h.shape)
    for _ in range(n_hidden_layers):
        y = jnp.dot(h.astype(jnp.bfloat16), w_h,
                    preferred_element_type=jnp.float32)
        h = jnp.maximum(y + b_h, 0.0)

    # ---- output layer: Linear (no activation), lane-padded in the wrapper ----
    y = jnp.dot(h.astype(jnp.bfloat16), w_out_ref[...],
                preferred_element_type=jnp.float32)
    o_ref[...] = (y + b_out_ref[...]).astype(o_ref.dtype)


def mlp_forward(x, params, *, n_hidden_layers, tm=512):
    """x: (batch, n_input) f32.  params: (w_in, b_in, w_h, b_h, w_out, b_out)."""
    w_in, b_in, w_h, b_h, w_out, b_out = params
    batch, n_input = x.shape
    n_hidden = w_in.shape[1]
    n_out = w_out.shape[1]

    # Lane-dense output: pad n_out up to a multiple of 128 (zero columns),
    # slice back after the call -> unmasked vst on the output tile.
    n_out_p = _round_up(n_out, 128)
    if n_out_p != n_out:
        w_out = jnp.pad(w_out, ((0, 0), (0, n_out_p - n_out)))
        b_out = jnp.pad(b_out, ((0, 0), (0, n_out_p - n_out)))

    # Batch tiling: tm rows per grid step (sublane multiple of 8).  Weights
    # use constant index maps so they stay VMEM-resident across grid steps.
    batch_8 = _round_up(batch, 8)
    tm = min(tm, batch_8)
    batch_p = _round_up(batch_8, tm)
    if batch_p != batch:
        x = jnp.pad(x, ((0, batch_p - batch), (0, 0)))

    # bf16 weights feed the MXU (and halve weight DMA); biases stay f32 for
    # the VPU epilogue.
    w_in = w_in.astype(jnp.bfloat16)
    w_h = w_h.astype(jnp.bfloat16)
    w_out = w_out.astype(jnp.bfloat16)

    kernel = functools.partial(mlp_kernel, n_hidden_layers=n_hidden_layers)

    out = pl.pallas_call(
        kernel,
        out_shape=jax.ShapeDtypeStruct((batch_p, n_out_p), jnp.float32),
        grid=(batch_p // tm,),
        in_specs=[
            pl.BlockSpec((tm, n_input), lambda i: (i, 0)),         # x tile
            pl.BlockSpec((n_input, n_hidden), lambda i: (0, 0)),   # w_in (resident)
            pl.BlockSpec((1, n_hidden), lambda i: (0, 0)),         # b_in
            pl.BlockSpec((n_hidden, n_hidden), lambda i: (0, 0)),  # w_h (shared, resident)
            pl.BlockSpec((1, n_hidden), lambda i: (0, 0)),         # b_h
            pl.BlockSpec((n_hidden, n_out_p), lambda i: (0, 0)),   # w_out (resident)
            pl.BlockSpec((1, n_out_p), lambda i: (0, 0)),          # b_out
        ],
        out_specs=pl.BlockSpec((tm, n_out_p), lambda i: (i, 0)),
        compiler_params=pltpu.CompilerParams(
            dimension_semantics=("parallel",)),                    # multi-TC chips split the batch grid
    )(x, w_in, b_in, w_h, b_h, w_out, b_out)

    return out[:batch, :n_out]


def init_params(key, n_input, n_output, n_hidden_neurons):
    """Deterministic init mimicking nn.Linear's uniform(-1/sqrt(fan_in), ...)."""
    def linear(key, fan_in, fan_out):
        kw, kb = jax.random.split(key)
        bound = 1.0 / jnp.sqrt(float(fan_in))
        w = jax.random.uniform(kw, (fan_in, fan_out), jnp.float32, -bound, bound)
        b = jax.random.uniform(kb, (1, fan_out), jnp.float32, -bound, bound)
        return w, b

    k_in, k_h, k_out = jax.random.split(key, 3)
    w_in, b_in = linear(k_in, n_input, n_hidden_neurons)
    w_h, b_h = linear(k_h, n_hidden_neurons, n_hidden_neurons)   # ONE shared hidden layer
    w_out, b_out = linear(k_out, n_hidden_neurons, n_output)
    return w_in, b_in, w_h, b_h, w_out, b_out


def mlp_reference(x, params, *, n_hidden_layers):
    """Pure-JAX reference mirroring the kernel's numerics exactly
    (bf16 matmul inputs, f32 accumulation, f32 bias/ReLU epilogue)."""
    w_in, b_in, w_h, b_h, w_out, b_out = params
    bf, f32 = jnp.bfloat16, jnp.float32
    h = jnp.dot(x.astype(bf), w_in.astype(bf), preferred_element_type=f32)
    h = jnp.maximum(h + b_in, 0.0)
    for _ in range(n_hidden_layers):
        y = jnp.dot(h.astype(bf), w_h.astype(bf), preferred_element_type=f32)
        h = jnp.maximum(y + b_h, 0.0)
    return jnp.dot(h.astype(bf), w_out.astype(bf), preferred_element_type=f32) + b_out


if __name__ == "__main__":
    # Small shapes consistent with the module's defaults / forward.
    batch, n_input, n_output = 8, 32, 16
    n_hidden_layers, n_hidden_neurons = 8, 256

    key = jax.random.PRNGKey(0)
    k_x, k_p = jax.random.split(key)
    x = jax.random.normal(k_x, (batch, n_input), jnp.float32)
    params = init_params(k_p, n_input, n_output, n_hidden_neurons)

    out = mlp_forward(x, params, n_hidden_layers=n_hidden_layers)
    out = jax.block_until_ready(out)

    ref = mlp_reference(x, params, n_hidden_layers=n_hidden_layers)
    assert out.shape == (batch, n_output)
    assert jnp.allclose(out, ref, atol=1e-3, rtol=1e-3), "mismatch vs reference"

    print("KERNEL_OK")
</pallas_src>

<mosaic_0001>
module attributes {stable_mosaic.version = 11 : i64} {
  func.func @mlp_kernel(%arg0: i32, %arg1: memref<8x32xf32, #tpu.memory_space<vmem>>, %arg2: memref<32x256xbf16, #tpu.memory_space<vmem>>, %arg3: memref<1x256xf32, #tpu.memory_space<vmem>>, %arg4: memref<256x256xbf16, #tpu.memory_space<vmem>>, %arg5: memref<1x256xf32, #tpu.memory_space<vmem>>, %arg6: memref<256x128xbf16, #tpu.memory_space<vmem>>, %arg7: memref<1x128xf32, #tpu.memory_space<vmem>>, %arg8: memref<8x128xf32, #tpu.memory_space<vmem>>) attributes {dimension_semantics = [#tpu.dimension_semantics<parallel>], iteration_bounds = array<i64: 1>, scalar_prefetch = 0 : i64, scratch_operands = 0 : i64, tpu.core_type = #tpu.core_type<tc>, window_params = [{transform_indices = @transform_0, window_bounds = array<i64: 8, 32>}, {pipeline_mode = #tpu.pipeline_mode<synchronous>, transform_indices = @transform_1, window_bounds = array<i64: 32, 256>}, {pipeline_mode = #tpu.pipeline_mode<synchronous>, transform_indices = @transform_2, window_bounds = array<i64: 1, 256>}, {pipeline_mode = #tpu.pipeline_mode<synchronous>, transform_indices = @transform_3, window_bounds = array<i64: 256, 256>}, {pipeline_mode = #tpu.pipeline_mode<synchronous>, transform_indices = @transform_4, window_bounds = array<i64: 1, 256>}, {pipeline_mode = #tpu.pipeline_mode<synchronous>, transform_indices = @transform_5, window_bounds = array<i64: 256, 128>}, {pipeline_mode = #tpu.pipeline_mode<synchronous>, transform_indices = @transform_6, window_bounds = array<i64: 1, 128>}, {transform_indices = @transform_7, window_bounds = array<i64: 8, 128>}]} {
    %c0 = arith.constant 0 : index
    %c0_0 = arith.constant 0 : index
    %0 = vector.load %arg1[%c0, %c0_0] : memref<8x32xf32, #tpu.memory_space<vmem>>, vector<8x32xf32>
    %1 = arith.truncf %0 : vector<8x32xf32> to vector<8x32xbf16>
    %c0_1 = arith.constant 0 : index
    %c0_2 = arith.constant 0 : index
    %2 = vector.load %arg2[%c0_1, %c0_2] : memref<32x256xbf16, #tpu.memory_space<vmem>>, vector<32x256xbf16>
    %cst = arith.constant dense<0.000000e+00> : vector<8x256xf32>
    %3 = tpu.matmul %1, %2, %cst {dimension_numbers = #tpu.dot_dimension_numbers<[1], [0], [0], [1], [0, 0, 1, 1], [], []>} : vector<8x32xbf16>, vector<32x256xbf16>, vector<8x256xf32> -> vector<8x256xf32>
    %c0_3 = arith.constant 0 : index
    %c0_4 = arith.constant 0 : index
    %4 = vector.load %arg3[%c0_3, %c0_4] : memref<1x256xf32, #tpu.memory_space<vmem>>, vector<1x256xf32>
    %5 = vector.broadcast %4 : vector<1x256xf32> to vector<8x256xf32>
    %6 = arith.addf %3, %5 : vector<8x256xf32>
    %cst_5 = arith.constant 0.000000e+00 : f32
    %7 = vector.broadcast %cst_5 : f32 to vector<8x256xf32>
    %8 = arith.maximumf %6, %7 : vector<8x256xf32>
    %c0_6 = arith.constant 0 : index
    %c0_7 = arith.constant 0 : index
    %9 = vector.load %arg4[%c0_6, %c0_7] : memref<256x256xbf16, #tpu.memory_space<vmem>>, vector<256x256xbf16>
    %c0_8 = arith.constant 0 : index
    %c0_9 = arith.constant 0 : index
    %10 = vector.load %arg5[%c0_8, %c0_9] : memref<1x256xf32, #tpu.memory_space<vmem>>, vector<1x256xf32>
    %11 = vector.shape_cast %10 : vector<1x256xf32> to vector<1x256xf32>
    %12 = vector.broadcast %11 : vector<1x256xf32> to vector<8x256xf32>
    %13 = arith.truncf %8 : vector<8x256xf32> to vector<8x256xbf16>
    %cst_10 = arith.constant dense<0.000000e+00> : vector<8x256xf32>
    %14 = tpu.matmul %13, %9, %cst_10 {dimension_numbers = #tpu.dot_dimension_numbers<[1], [0], [0], [1], [0, 0, 1, 1], [], []>} : vector<8x256xbf16>, vector<256x256xbf16>, vector<8x256xf32> -> vector<8x256xf32>
    %15 = arith.addf %14, %12 : vector<8x256xf32>
    %cst_11 = arith.constant 0.000000e+00 : f32
    %16 = vector.broadcast %cst_11 : f32 to vector<8x256xf32>
    %17 = arith.maximumf %15, %16 : vector<8x256xf32>
    %18 = arith.truncf %17 : vector<8x256xf32> to vector<8x256xbf16>
    %cst_12 = arith.constant dense<0.000000e+00> : vector<8x256xf32>
    %19 = tpu.matmul %18, %9, %cst_12 {dimension_numbers = #tpu.dot_dimension_numbers<[1], [0], [0], [1], [0, 0, 1, 1], [], []>} : vector<8x256xbf16>, vector<256x256xbf16>, vector<8x256xf32> -> vector<8x256xf32>
    %20 = arith.addf %19, %12 : vector<8x256xf32>
    %cst_13 = arith.constant 0.000000e+00 : f32
    %21 = vector.broadcast %cst_13 : f32 to vector<8x256xf32>
    %22 = arith.maximumf %20, %21 : vector<8x256xf32>
    %23 = arith.truncf %22 : vector<8x256xf32> to vector<8x256xbf16>
    %cst_14 = arith.constant dense<0.000000e+00> : vector<8x256xf32>
    %24 = tpu.matmul %23, %9, %cst_14 {dimension_numbers = #tpu.dot_dimension_numbers<[1], [0], [0], [1], [0, 0, 1, 1], [], []>} : vector<8x256xbf16>, vector<256x256xbf16>, vector<8x256xf32> -> vector<8x256xf32>
    %25 = arith.addf %24, %12 : vector<8x256xf32>
    %cst_15 = arith.constant 0.000000e+00 : f32
    %26 = vector.broadcast %cst_15 : f32 to vector<8x256xf32>
    %27 = arith.maximumf %25, %26 : vector<8x256xf32>
    %28 = arith.truncf %27 : vector<8x256xf32> to vector<8x256xbf16>
    %cst_16 = arith.constant dense<0.000000e+00> : vector<8x256xf32>
    %29 = tpu.matmul %28, %9, %cst_16 {dimension_numbers = #tpu.dot_dimension_numbers<[1], [0], [0], [1], [0, 0, 1, 1], [], []>} : vector<8x256xbf16>, vector<256x256xbf16>, vector<8x256xf32> -> vector<8x256xf32>
    %30 = arith.addf %29, %12 : vector<8x256xf32>
    %cst_17 = arith.constant 0.000000e+00 : f32
    %31 = vector.broadcast %cst_17 : f32 to vector<8x256xf32>
    %32 = arith.maximumf %30, %31 : vector<8x256xf32>
    %33 = arith.truncf %32 : vector<8x256xf32> to vector<8x256xbf16>
    %cst_18 = arith.constant dense<0.000000e+00> : vector<8x256xf32>
    %34 = tpu.matmul %33, %9, %cst_18 {dimension_numbers = #tpu.dot_dimension_numbers<[1], [0], [0], [1], [0, 0, 1, 1], [], []>} : vector<8x256xbf16>, vector<256x256xbf16>, vector<8x256xf32> -> vector<8x256xf32>
    %35 = arith.addf %34, %12 : vector<8x256xf32>
    %cst_19 = arith.constant 0.000000e+00 : f32
    %36 = vector.broadcast %cst_19 : f32 to vector<8x256xf32>
    %37 = arith.maximumf %35, %36 : vector<8x256xf32>
    %38 = arith.truncf %37 : vector<8x256xf32> to vector<8x256xbf16>
    %cst_20 = arith.constant dense<0.000000e+00> : vector<8x256xf32>
    %39 = tpu.matmul %38, %9, %cst_20 {dimension_numbers = #tpu.dot_dimension_numbers<[1], [0], [0], [1], [0, 0, 1, 1], [], []>} : vector<8x256xbf16>, vector<256x256xbf16>, vector<8x256xf32> -> vector<8x256xf32>
    %40 = arith.addf %39, %12 : vector<8x256xf32>
    %cst_21 = arith.constant 0.000000e+00 : f32
    %41 = vector.broadcast %cst_21 : f32 to vector<8x256xf32>
    %42 = arith.maximumf %40, %41 : vector<8x256xf32>
    %43 = arith.truncf %42 : vector<8x256xf32> to vector<8x256xbf16>
    %cst_22 = arith.constant dense<0.000000e+00> : vector<8x256xf32>
    %44 = tpu.matmul %43, %9, %cst_22 {dimension_numbers = #tpu.dot_dimension_numbers<[1], [0], [0], [1], [0, 0, 1, 1], [], []>} : vector<8x256xbf16>, vector<256x256xbf16>, vector<8x256xf32> -> vector<8x256xf32>
    %45 = arith.addf %44, %12 : vector<8x256xf32>
    %cst_23 = arith.constant 0.000000e+00 : f32
    %46 = vector.broadcast %cst_23 : f32 to vector<8x256xf32>
    %47 = arith.maximumf %45, %46 : vector<8x256xf32>
    %48 = arith.truncf %47 : vector<8x256xf32> to vector<8x256xbf16>
    %cst_24 = arith.constant dense<0.000000e+00> : vector<8x256xf32>
    %49 = tpu.matmul %48, %9, %cst_24 {dimension_numbers = #tpu.dot_dimension_numbers<[1], [0], [0], [1], [0, 0, 1, 1], [], []>} : vector<8x256xbf16>, vector<256x256xbf16>, vector<8x256xf32> -> vector<8x256xf32>
    %50 = arith.addf %49, %12 : vector<8x256xf32>
    %cst_25 = arith.constant 0.000000e+00 : f32
    %51 = vector.broadcast %cst_25 : f32 to vector<8x256xf32>
    %52 = arith.maximumf %50, %51 : vector<8x256xf32>
    %53 = arith.truncf %52 : vector<8x256xf32> to vector<8x256xbf16>
    %c0_26 = arith.constant 0 : index
    %c0_27 = arith.constant 0 : index
    %54 = vector.load %arg6[%c0_26, %c0_27] : memref<256x128xbf16, #tpu.memory_space<vmem>>, vector<256x128xbf16>
    %cst_28 = arith.constant dense<0.000000e+00> : vector<8x128xf32>
    %55 = tpu.matmul %53, %54, %cst_28 {dimension_numbers = #tpu.dot_dimension_numbers<[1], [0], [0], [1], [0, 0, 1, 1], [], []>} : vector<8x256xbf16>, vector<256x128xbf16>, vector<8x128xf32> -> vector<8x128xf32>
    %c0_29 = arith.constant 0 : index
    %c0_30 = arith.constant 0 : index
    %56 = vector.load %arg7[%c0_29, %c0_30] : memref<1x128xf32, #tpu.memory_space<vmem>>, vector<1x128xf32>
    %57 = vector.broadcast %56 : vector<1x128xf32> to vector<8x128xf32>
    %58 = arith.addf %55, %57 : vector<8x128xf32>
    %c0_31 = arith.constant 0 : index
    %c0_32 = arith.constant 0 : index
    %59 = vector.load %arg8[%c0_31, %c0_32] : memref<8x128xf32, #tpu.memory_space<vmem>>, vector<8x128xf32>
    tpu.vector_store %arg8[%c0_31, %c0_32], %58 {strides = array<i32>} : memref<8x128xf32, #tpu.memory_space<vmem>>, vector<8x128xf32>,
    return
  }
  func.func @transform_0(%arg0: i32) -> (i32, i32) {
    %c0_i32 = arith.constant 0 : i32
    %c0_i32_0 = arith.constant 0 : i32
    return %arg0, %c0_i32 : i32, i32
  }
  func.func @transform_1(%arg0: i32) -> (i32, i32) {
    %c0_i32 = arith.constant 0 : i32
    %c0_i32_0 = arith.constant 0 : i32
    %c0_i32_1 = arith.constant 0 : i32
    return %c0_i32, %c0_i32_0 : i32, i32
  }
  func.func @transform_2(%arg0: i32) -> (i32, i32) {
    %c0_i32 = arith.constant 0 : i32
    %c0_i32_0 = arith.constant 0 : i32
    %c0_i32_1 = arith.constant 0 : i32
    return %c0_i32, %c0_i32_0 : i32, i32
  }
  func.func @transform_3(%arg0: i32) -> (i32, i32) {
    %c0_i32 = arith.constant 0 : i32
    %c0_i32_0 = arith.constant 0 : i32
    %c0_i32_1 = arith.constant 0 : i32
    return %c0_i32, %c0_i32_0 : i32, i32
  }
  func.func @transform_4(%arg0: i32) -> (i32, i32) {
    %c0_i32 = arith.constant 0 : i32
    %c0_i32_0 = arith.constant 0 : i32
    %c0_i32_1 = arith.constant 0 : i32
    return %c0_i32, %c0_i32_0 : i32, i32
  }
  func.func @transform_5(%arg0: i32) -> (i32, i32) {
    %c0_i32 = arith.constant 0 : i32
    %c0_i32_0 = arith.constant 0 : i32
    %c0_i32_1 = arith.constant 0 : i32
    return %c0_i32, %c0_i32_0 : i32, i32
  }
  func.func @transform_6(%arg0: i32) -> (i32, i32) {
    %c0_i32 = arith.constant 0 : i32
    %c0_i32_0 = arith.constant 0 : i32
    %c0_i32_1 = arith.constant 0 : i32
    return %c0_i32, %c0_i32_0 : i32, i32
  }
  func.func @transform_7(%arg0: i32) -> (i32, i32) {
    %c0_i32 = arith.constant 0 : i32
    %c0_i32_0 = arith.constant 0 : i32
    return %arg0, %c0_i32 : i32, i32
  }
}

</mosaic_0001>

<bundles_post_ra>
// kernel: tpu_custom_call.1
= control target key start
LH: loop header
LB: loop body
LE: loop exit
PB: predicated region body
PF: predicated region fallthrough
CT: control target
= control target key end

     0   :  { %12 = vsyncpa [#allocation3], 0  ;;  %s1833_s0 = inlined_call_operand.hbm [shape: f32[8,32], index: 0, kind: input, shape index: {}]   ;;  %s1834_s1 = inlined_call_operand.hbm [shape: bf16[32,256], index: 1, kind: input, shape index: {}]   ;;  %s1835_s2 = inlined_call_operand.hbm [shape: f32[1,256], index: 2, kind: input, shape index: {}]   ;;  %s1836_s3 = inlined_call_operand.hbm [shape: bf16[256,256], index: 3, kind: input, shape index: {}]   ;;  %s1837_s4 = inlined_call_operand.vmem [shape: f32[1,256], index: 4, kind: input, shape index: {}]   ;;  %s1838_s5 = inlined_call_operand.hbm [shape: bf16[256,128], index: 5, kind: input, shape index: {}]   ;;  %s1839_s6 = inlined_call_operand.vmem [shape: f32[1,128], index: 6, kind: input, shape index: {}]   ;;  %s1840_s7 = inlined_call_operand.hbm [shape: f32[8,128], index: 7, kind: output, shape index: {}]  }
   0x1   :  { %13 = vsyncpa [#allocation6], 0 }
   0x2   :  { %14 = vsyncpa [#allocation9], 0  ;;  %s31_s26 = sshll.u32 %s1834_s1, 4  ;;  %s32_s26 = int_to_ptr.hbm [resolvable:$true] %s31_s26 }
   0x3   :  { %15 = vsyncpa [#allocation4], 0  ;;  %s1417_s27 = smov [#allocation5]   ;;  %s55_s8 = sshll.u32 %s1836_s3, 4  ;;  %s56_s8 = int_to_ptr.hbm [resolvable:$true] %s55_s8 }
   0x4   :  { %s33_s28 = sshll.u32 %s1417_s27, 4  ;;  %s1418_s9 = smov 128   ;;  %s34_s28 = int_to_ptr.vmem [resolvable:$true] %s33_s28 }
   0x5   :  { %s1419_s10 = smov 8   ;;  %s1420_s11 = smov [#allocation8]  }
   0x6   :  { %39 = dma.hbm_to_vmem [thread:$0]  %s32_s26, 512, %s34_s28, [#allocation6], %s1418_s9, %s1418_s9, %s1419_s10  }
   0x7   :  { %s57_s12 = sshll.u32 %s1420_s11, 4  ;;  %s21_s15 = sshll.u32 %s1833_s0, 4  ;;  %s58_s12 = int_to_ptr.vmem [resolvable:$true] %s57_s12  ;;  %s22_s15 = int_to_ptr.hbm [resolvable:$true] %s21_s15 }
   0x8   :  { %63 = dma.hbm_to_vmem [thread:$0]  %s56_s8, 4096, %s58_s12, [#allocation9], %s1418_s9, %s1418_s9, %s1419_s10  }
   0x9   :  { %s45_s17 = sshll.u32 %s1835_s2, 4  ;;  %s1421_s18 = smov [#allocation2]   ;;  %s46_s17 = int_to_ptr.hbm [resolvable:$true] %s45_s17 }
   0xa   :  { %s23_s19 = sshll.u32 %s1421_s18, 4  ;;  %s1422_s3 = smov [#allocation7]   ;;  %s24_s19 = int_to_ptr.vmem [resolvable:$true] %s23_s19 }
   0xb   :  { %26 = dma.hbm_to_vmem [thread:$0]  %s22_s15, 128, %s24_s19, [#allocation3]  }
   0xc   :  { %s47_s20 = sshll.u32 %s1422_s3, 4  ;;  %s70_s23 = sshll.u32 %s1838_s5, 4  ;;  %s48_s20 = int_to_ptr.vmem [resolvable:$true] %s47_s20  ;;  %s71_s23 = int_to_ptr.hbm [resolvable:$true] %s70_s23 }
   0xd   :  { %50 = dma.hbm_to_vmem [thread:$0]  %s46_s17, 32, %s48_s20, [#allocation6]  }
   0xe   :  { %s1423_s0 = smov [#allocation10]   ;;  %s1424_s25 = smov 64  }
   0xf   :  { %s72_s24 = sshll.u32 %s1423_s0, 4  ;;  %s1425_s26 = smov 4   ;;  %s73_s24 = int_to_ptr.vmem [resolvable:$true] %s72_s24 }
  0x10   :  { %78 = dma.hbm_to_vmem [thread:$0]  %s71_s23, 2048, %s73_s24, [#allocation9], %s1424_s25, %s1424_s25, %s1425_s26  }
  0x11   :  { %1409 = dma.done.wait [#allocation3], 128  }
  0x12   :  { %1410 = vsyncadd [#allocation3], 4294967168 }
  0x13   :  { %1411 = dma.done.wait [#allocation6], 544  }
  0x14   :  { %1412 = vsyncadd [#allocation6], 4294966752 }
  0x15   :  { %1413 = dma.done.wait [#allocation9], 6144  }
  0x16   :  { %1414 = vsyncadd [#allocation9], 4294961152  ;;  %v1002_v0 = vld [vmem:[#allocation5 + $0x10] sm:$0xf]  ;;  %v1205_v1 = vld [vmem:[#allocation5 + $0x14] sm:$0xf0] }
  0x17   :  { %v1204_v2 = vld [vmem:[#allocation5 + $0x14] sm:$0xf]  ;;  %v1003_v3 = vor.u32 %v1205_v1, %v1002_v0  ;;  %v1004_v4 = vld [vmem:[#allocation5 + $0x18] sm:$0xf0]  ;;  %v994_v5 = vld [vmem:[#allocation5] sm:$0xf] }
  0x18   :  { %v1203_v6 = vld [vmem:[#allocation5 + $0x4] sm:$0xf0]  ;;  %v1007_v7 = vor.u32 %v1204_v2, %v1004_v4  ;;  %v1202_v8 = vld [vmem:[#allocation5 + $0x4] sm:$0xf]  ;;  %v996_v9 = vld [vmem:[#allocation5 + $0x8] sm:$0xf0] }
  0x19   :  { %v102_v10 = vld [vmem:[#allocation2] sm:$0xff]  ;;  %vm134_vm0 = vcmask 261120   ;;  %144 = vmatpush.bf16.msra.mxu0 %v1003_v3  ;;  %v995_v11 = vor.u32 %v1203_v6, %v994_v5  ;;  %v1068_v12 = vld [vmem:[#allocation8 + $0x70] sm:$0xf]  ;;  %v999_v15 = vor.u32 %v1202_v8, %v996_v9  ;;  %v1060_v24 = vld [vmem:[#allocation8 + $0x60] sm:$0xf] }
  0x1a   :  { %v1221_v13 = vld [vmem:[#allocation8 + $0x74] sm:$0xf0]  ;;  %v1132_v14 = vld [vmem:[#allocation8 + $0xf0] sm:$0xf]  ;;  %157 = vmatpush.bf16.msra.mxu1 %v1007_v7  ;;  %v1220_v18 = vld [vmem:[#allocation8 + $0x74] sm:$0xf]  ;;  %v103_v25 = vpack.c.bf16 %v102_v10, %v102_v10 }
  0x1b   :  { %v1482_v16 = vor.u32 %v1221_v13, %v1068_v12  ;;  %v1237_v17 = vld [vmem:[#allocation8 + $0xf4] sm:$0xf0]  ;;  %v1070_v19 = vld [vmem:[#allocation8 + $0x78] sm:$0xf0]  ;;  %v1236_v22 = vld [vmem:[#allocation8 + $0xf4] sm:$0xf] }
  0x1c   :  { %v1484_v20 = vor.u32 %v1237_v17, %v1132_v14  ;;  %v1486_v21 = vor.u32 %v1220_v18, %v1070_v19  ;;  %v1134_v23 = vld [vmem:[#allocation8 + $0xf8] sm:$0xf0]  ;;  %v1219_v27 = vld [vmem:[#allocation8 + $0x64] sm:$0xf0]  ;;  %v1124_v28 = vld [vmem:[#allocation8 + $0xe0] sm:$0xf] }
  0x1d   :  { %366 = vmatpush.bf16.msra.mxu2 %v1482_v16  ;;  %v1489_v26 = vor.u32 %v1236_v22, %v1134_v23  ;;  %v1235_v29 = vld [vmem:[#allocation8 + $0xe4] sm:$0xf0]  ;;  %145 = vmatpush.bf16.msra.mxu0 %v995_v11  ;;  %v1492_v30 = vor.u32 %v1219_v27, %v1060_v24  ;;  %v1218_v32 = vld [vmem:[#allocation8 + $0x64] sm:$0xf]  ;;  %v1062_v33 = vld [vmem:[#allocation8 + $0x68] sm:$0xf0] }
  0x1e   :  { %379 = vmatpush.bf16.msra.mxu3 %v1484_v20  ;;  %v1494_v31 = vor.u32 %v1235_v29, %v1124_v28  ;;  %v1234_v34 = vld [vmem:[#allocation8 + $0xe4] sm:$0xf]  ;;  %158 = vmatpush.bf16.msra.mxu1 %v999_v15  ;;  %v1497_v35 = vor.u32 %v1218_v32, %v1062_v33  ;;  %v1126_v36 = vld [vmem:[#allocation8 + $0xe8] sm:$0xf0]  ;;  %v1052_v37 = vld [vmem:[#allocation8 + $0x50] sm:$0xf] }
  0x1f   :  { %v1217_v38 = vld [vmem:[#allocation8 + $0x54] sm:$0xf0]  ;;  %v1500_v39 = vor.u32 %v1234_v34, %v1126_v36  ;;  %v1116_v40 = vld [vmem:[#allocation8 + $0xd0] sm:$0xf]  ;;  %v1216_v42 = vld [vmem:[#allocation8 + $0x54] sm:$0xf] }
  0x20   :  { %v1233_v41 = vld [vmem:[#allocation8 + $0xd4] sm:$0xf0]  ;;  %1008 = vmatmul.msk.bf16.vlgmr.msra.gmra.mxu0 %vm134_vm0, %v103_v25  ;;  %v1504_v43 = vor.u32 %v1217_v38, %v1052_v37  ;;  %v1054_v44 = vld [vmem:[#allocation8 + $0x58] sm:$0xf0]  ;;  %v1232_v45 = vld [vmem:[#allocation8 + $0xd4] sm:$0xf] }
  0x21   :  { %392 = vmatpush.bf16.msrb.mxu0 %v1486_v21  ;;  %367 = vmatpush.bf16.msra.mxu2 %v1492_v30  ;;  %v1118_v46 = vld [vmem:[#allocation8 + $0xd8] sm:$0xf0]  ;;  %v1508_v47 = vor.u32 %v1233_v41, %v1116_v40  ;;  %v1044_v48 = vld [vmem:[#allocation8 + $0x40] sm:$0xf]  ;;  %v1215_v49 = vld [vmem:[#allocation8 + $0x44] sm:$0xf0]  ;;  %v1511_v50 = vor.u32 %v1216_v42, %v1054_v44 }
  0x22   :  { %405 = vmatpush.bf16.msrb.mxu1 %v1489_v26  ;;  %380 = vmatpush.bf16.msra.mxu3 %v1494_v31  ;;  %v1108_v51 = vld [vmem:[#allocation8 + $0xc0] sm:$0xf]  ;;  %v1231_v52 = vld [vmem:[#allocation8 + $0xc4] sm:$0xf0]  ;;  %v1514_v53 = vor.u32 %v1232_v45, %v1118_v46  ;;  %v1214_v54 = vld [vmem:[#allocation8 + $0x44] sm:$0xf]  ;;  %v1517_v56 = vor.u32 %v1215_v49, %v1044_v48 }
  0x23   :  { %1009 = vmatmul.msk.bf16.vlgmr.msra.gmra.mxu1 %vm134_vm0, %v103_v25  ;;  %v1046_v55 = vld [vmem:[#allocation8 + $0x48] sm:$0xf0]  ;;  %v1230_v57 = vld [vmem:[#allocation8 + $0xc4] sm:$0xf]  ;;  %v1520_v59 = vor.u32 %v1231_v52, %v1108_v51  ;;  %v1036_v60 = vld [vmem:[#allocation8 + $0x30] sm:$0xf] }
  0x24   :  { %v1110_v58 = vld [vmem:[#allocation8 + $0xc8] sm:$0xf0]  ;;  %v1213_v61 = vld [vmem:[#allocation8 + $0x34] sm:$0xf0]  ;;  %v1523_v62 = vor.u32 %v1214_v54, %v1046_v55  ;;  %v1100_v63 = vld [vmem:[#allocation8 + $0xb0] sm:$0xf] }
  0x25   :  { %393 = vmatpush.bf16.msrb.mxu0 %v1497_v35  ;;  %368 = vmatpush.bf16.msra.mxu2 %v1504_v43  ;;  %v1229_v0 = vld [vmem:[#allocation8 + $0xb4] sm:$0xf0]  ;;  %v1526_v1 = vor.u32 %v1230_v57, %v1110_v58  ;;  %v1212_v2 = vld [vmem:[#allocation8 + $0x34] sm:$0xf]  ;;  %v1038_v3 = vld [vmem:[#allocation8 + $0x38] sm:$0xf0]  ;;  %v1529_v4 = vor.u32 %v1213_v61, %v1036_v60 }
  0x26   :  { %406 = vmatpush.bf16.msrb.mxu1 %v1500_v39  ;;  %381 = vmatpush.bf16.msra.mxu3 %v1508_v47  ;;  %v1228_v5 = vld [vmem:[#allocation8 + $0xb4] sm:$0xf]  ;;  %v1102_v6 = vld [vmem:[#allocation8 + $0xb8] sm:$0xf0]  ;;  %v1532_v7 = vor.u32 %v1229_v0, %v1100_v63  ;;  %v1028_v8 = vld [vmem:[#allocation8 + $0x20] sm:$0xf]  ;;  %v1535_v10 = vor.u32 %v1212_v2, %v1038_v3 }
  0x27   :  { %v1211_v9 = vld [vmem:[#allocation8 + $0x24] sm:$0xf0]  ;;  %v1092_v11 = vld [vmem:[#allocation8 + $0xa0] sm:$0xf]  ;;  %v1538_v13 = vor.u32 %v1228_v5, %v1102_v6  ;;  %v1210_v14 = vld [vmem:[#allocation8 + $0x24] sm:$0xf] }
  0x28   :  { %v1227_v12 = vld [vmem:[#allocation8 + $0xa4] sm:$0xf0]  ;;  %v1030_v15 = vld [vmem:[#allocation8 + $0x28] sm:$0xf0]  ;;  %v1541_v17 = vor.u32 %v1211_v9, %v1028_v8  ;;  %v1226_v18 = vld [vmem:[#allocation8 + $0xa4] sm:$0xf] }
  0x29   :  { %394 = vmatpush.bf16.msrb.mxu0 %v1511_v50  ;;  %369 = vmatpush.bf16.msra.mxu2 %v1517_v56  ;;  %v1094_v19 = vld [vmem:[#allocation8 + $0xa8] sm:$0xf0]  ;;  %v1544_v22 = vor.u32 %v1227_v12, %v1092_v11  ;;  %v1547_v23 = vor.u32 %v1210_v14, %v1030_v15  ;;  %v1020_v25 = vld [vmem:[#allocation8 + $0x10] sm:$0xf]  ;;  %v1209_v27 = vld [vmem:[#allocation8 + $0x14] sm:$0xf0] }
  0x2a   :  { %407 = vmatpush.bf16.msrb.mxu1 %v1514_v53  ;;  %382 = vmatpush.bf16.msra.mxu3 %v1520_v59  ;;  %v1550_v24 = vor.u32 %v1226_v18, %v1094_v19  ;;  %v1084_v28 = vld [vmem:[#allocation8 + $0x90] sm:$0xf]  ;;  %v1556_v29 = vor.u32 %v1209_v27, %v1020_v25  ;;  %v1225_v32 = vld [vmem:[#allocation8 + $0x94] sm:$0xf0]  ;;  %v1208_v33 = vld [vmem:[#allocation8 + $0x14] sm:$0xf] }
  0x2b   :  { %v1022_v34 = vld [vmem:[#allocation8 + $0x18] sm:$0xf0]  ;;  %v1558_v36 = vor.u32 %v1225_v32, %v1084_v28  ;;  %v1224_v38 = vld [vmem:[#allocation8 + $0x94] sm:$0xf]  ;;  %v1012_v42 = vld [vmem:[#allocation8] sm:$0xf] }
  0x2c   :  { %v1560_v37 = vor.u32 %v1208_v33, %v1022_v34  ;;  %v1086_v40 = vld [vmem:[#allocation8 + $0x98] sm:$0xf0]  ;;  %v1207_v44 = vld [vmem:[#allocation8 + $0x4] sm:$0xf0]  ;;  %v1076_v45 = vld [vmem:[#allocation8 + $0x80] sm:$0xf] }
  0x2d   :  { %395 = vmatpush.bf16.msrb.mxu0 %v1523_v62  ;;  %370 = vmatpush.bf16.msra.mxu2 %v1529_v4  ;;  %v1563_v41 = vor.u32 %v1224_v38, %v1086_v40  ;;  %v1568_v46 = vor.u32 %v1207_v44, %v1012_v42  ;;  %v1223_v48 = vld [vmem:[#allocation8 + $0x84] sm:$0xf0]  ;;  %v1206_v49 = vld [vmem:[#allocation8 + $0x4] sm:$0xf]  ;;  %v1014_v51 = vld [vmem:[#allocation8 + $0x8] sm:$0xf0] }
  0x2e   :  { %408 = vmatpush.bf16.msrb.mxu1 %v1526_v1  ;;  %383 = vmatpush.bf16.msra.mxu3 %v1532_v7  ;;  %v1570_v52 = vor.u32 %v1223_v48, %v1076_v45  ;;  %v1572_v54 = vor.u32 %v1206_v49, %v1014_v51  ;;  %v1222_v55 = vld [vmem:[#allocation8 + $0x84] sm:$0xf]  ;;  %v1078_v57 = vld [vmem:[#allocation8 + $0x88] sm:$0xf0]  ;;  %v108_v60 = vld [vmem:[#allocation7] sm:$0x3] }
  0x2f   :  { %v1575_v58 = vor.u32 %v1222_v55, %v1078_v57  ;;  %v110_v61 = vperm.slane %v108_v60, 0  ;;  %v111_v63 = vperm.slane %v108_v60, 1  ;;  %v198_v15 = vld [vmem:[%s1837_s4] sm:$0x3]  ;;  %s1426_s28 = smov [#allocation11]   ;;  %s980_s9 = sshll.u32 %s1840_s7, 4  ;;  %s981_s9 = int_to_ptr.hbm [resolvable:$true] %s980_s9 }
  0x30   :  { %v1647_v18 = vperm.slane %v198_v15, 1  ;;  %v1650_v32 = vperm.slane %v198_v15, 0  ;;  %s978_s29 = sshll.u32 %s1426_s28, 4  ;;  %s979_s29 = int_to_ptr.vmem [resolvable:$true] %s978_s29 }
  0x31   :  { %396 = vmatpush.bf16.msrb.mxu0 %v1535_v10  ;;  %371 = vmatpush.bf16.msra.mxu2 %v1541_v17 }
  0x32   :  { %409 = vmatpush.bf16.msrb.mxu1 %v1538_v13  ;;  %384 = vmatpush.bf16.msra.mxu3 %v1544_v22 }
  0x35   :  { %397 = vmatpush.bf16.msrb.mxu0 %v1547_v23  ;;  %372 = vmatpush.bf16.msra.mxu2 %v1556_v29 }
  0x36   :  { %410 = vmatpush.bf16.msrb.mxu1 %v1550_v24  ;;  %385 = vmatpush.bf16.msra.mxu3 %v1558_v36 }
  0x39   :  { %398 = vmatpush.bf16.msrb.mxu0 %v1560_v37  ;;  %373 = vmatpush.bf16.msra.mxu2 %v1568_v46 }
  0x3a   :  { %411 = vmatpush.bf16.msrb.mxu1 %v1563_v41  ;;  %386 = vmatpush.bf16.msra.mxu3 %v1570_v52 }
  0x3d   :  { %399 = vmatpush.bf16.msrb.mxu0 %v1572_v54  ;;  %422 = vmatpush.bf16.msrb.mxu2 %v1482_v16 }
  0x3e   :  { %412 = vmatpush.bf16.msrb.mxu1 %v1575_v58  ;;  %435 = vmatpush.bf16.msrb.mxu3 %v1484_v20 }
  0x41   :  { %448 = vmatpush.bf16.msra.mxu0 %v1486_v21  ;;  %423 = vmatpush.bf16.msrb.mxu2 %v1492_v30 }
  0x42   :  { %461 = vmatpush.bf16.msra.mxu1 %v1489_v26  ;;  %436 = vmatpush.bf16.msrb.mxu3 %v1494_v31 }
  0x45   :  { %449 = vmatpush.bf16.msra.mxu0 %v1497_v35  ;;  %424 = vmatpush.bf16.msrb.mxu2 %v1504_v43 }
  0x46   :  { %462 = vmatpush.bf16.msra.mxu1 %v1500_v39  ;;  %437 = vmatpush.bf16.msrb.mxu3 %v1508_v47 }
  0x49   :  { %450 = vmatpush.bf16.msra.mxu0 %v1511_v50  ;;  %425 = vmatpush.bf16.msrb.mxu2 %v1517_v56 }
  0x4a   :  { %463 = vmatpush.bf16.msra.mxu1 %v1514_v53  ;;  %438 = vmatpush.bf16.msrb.mxu3 %v1520_v59 }
  0x4d   :  { %451 = vmatpush.bf16.msra.mxu0 %v1523_v62  ;;  %426 = vmatpush.bf16.msrb.mxu2 %v1529_v4 }
  0x4e   :  { %464 = vmatpush.bf16.msra.mxu1 %v1526_v1  ;;  %439 = vmatpush.bf16.msrb.mxu3 %v1532_v7 }
  0x51   :  { %452 = vmatpush.bf16.msra.mxu0 %v1535_v10  ;;  %427 = vmatpush.bf16.msrb.mxu2 %v1541_v17 }
  0x52   :  { %465 = vmatpush.bf16.msra.mxu1 %v1538_v13  ;;  %440 = vmatpush.bf16.msrb.mxu3 %v1544_v22 }
  0x55   :  { %453 = vmatpush.bf16.msra.mxu0 %v1547_v23  ;;  %428 = vmatpush.bf16.msrb.mxu2 %v1556_v29 }
  0x56   :  { %466 = vmatpush.bf16.msra.mxu1 %v1550_v24  ;;  %441 = vmatpush.bf16.msrb.mxu3 %v1558_v36 }
  0x59   :  { %454 = vmatpush.bf16.msra.mxu0 %v1560_v37  ;;  %429 = vmatpush.bf16.msrb.mxu2 %v1568_v46 }
  0x5a   :  { %467 = vmatpush.bf16.msra.mxu1 %v1563_v41  ;;  %442 = vmatpush.bf16.msrb.mxu3 %v1570_v52 }
  0x5d   :  { %455 = vmatpush.bf16.msra.mxu0 %v1572_v54 }
  0x5e   :  { %468 = vmatpush.bf16.msra.mxu1 %v1575_v58 }
  0x9d   :  { %v147_v0 = vpop.f32.mrf.mxu0 }
  0x9e   :  { %v148_v2 = vadd.f32 %v147_v0, %v110_v61 }
  0xa0   :  { %v160_v3 = vpop.f32.mrf.mxu1  ;;  %v164_v6 = vmax.f32 %v148_v2, 0.0 }
  0xa1   :  { %v161_v5 = vadd.f32 %v160_v3, %v111_v63 }
  0xa2   :  { %v204_v9 = vpack.c.bf16 %v164_v6, %v164_v6 }
  0xa3   :  { %v165_v8 = vmax.f32 %v161_v5, 0.0 }
  0xa4   :  { %374 = vmatmul.bf16.vlgmr.msra.gmra.mxu2 %v204_v9  ;;  %400 = vmatmul.bf16.vlgmr.msrb.gmra.mxu0 %v204_v9 }
  0xa5   :  { %v205_v11 = vpack.c.bf16 %v165_v8, %v165_v8  ;;  %v149_v12 = vpop.f32.mrf.mxu0  ;;  %478 = vmatpush.bf16.msra.mxu2 %v1482_v16  ;;  %504 = vmatpush.bf16.msrb.mxu0 %v1486_v21 }
  0xa7   :  { %387 = vmatmul.bf16.vlgmr.msra.gmra.mxu3 %v205_v11  ;;  %413 = vmatmul.bf16.vlgmr.msrb.gmra.mxu1 %v205_v11 }
  0xa8   :  { %v162_v14 = vpop.f32.mrf.mxu1  ;;  %491 = vmatpush.bf16.msra.mxu3 %v1484_v20  ;;  %517 = vmatpush.bf16.msrb.mxu1 %v1489_v26 }
  0xa9   :  { %479 = vmatpush.bf16.msra.mxu2 %v1492_v30  ;;  %505 = vmatpush.bf16.msrb.mxu0 %v1497_v35 }
  0xac   :  { %492 = vmatpush.bf16.msra.mxu3 %v1494_v31  ;;  %518 = vmatpush.bf16.msrb.mxu1 %v1500_v39 }
  0xad   :  { %480 = vmatpush.bf16.msra.mxu2 %v1504_v43  ;;  %506 = vmatpush.bf16.msrb.mxu0 %v1511_v50 }
  0xb0   :  { %493 = vmatpush.bf16.msra.mxu3 %v1508_v47  ;;  %519 = vmatpush.bf16.msrb.mxu1 %v1514_v53 }
  0xb1   :  { %481 = vmatpush.bf16.msra.mxu2 %v1517_v56  ;;  %507 = vmatpush.bf16.msrb.mxu0 %v1523_v62 }
  0xb4   :  { %494 = vmatpush.bf16.msra.mxu3 %v1520_v59  ;;  %520 = vmatpush.bf16.msrb.mxu1 %v1526_v1 }
  0xb5   :  { %482 = vmatpush.bf16.msra.mxu2 %v1529_v4  ;;  %508 = vmatpush.bf16.msrb.mxu0 %v1535_v10 }
  0xb8   :  { %495 = vmatpush.bf16.msra.mxu3 %v1532_v7  ;;  %521 = vmatpush.bf16.msrb.mxu1 %v1538_v13 }
  0xb9   :  { %483 = vmatpush.bf16.msra.mxu2 %v1541_v17  ;;  %509 = vmatpush.bf16.msrb.mxu0 %v1547_v23 }
  0xbc   :  { %496 = vmatpush.bf16.msra.mxu3 %v1544_v22  ;;  %522 = vmatpush.bf16.msrb.mxu1 %v1550_v24 }
  0xbd   :  { %484 = vmatpush.bf16.msra.mxu2 %v1556_v29  ;;  %510 = vmatpush.bf16.msrb.mxu0 %v1560_v37 }
  0xc0   :  { %497 = vmatpush.bf16.msra.mxu3 %v1558_v36  ;;  %523 = vmatpush.bf16.msrb.mxu1 %v1563_v41 }
  0xc1   :  { %485 = vmatpush.bf16.msra.mxu2 %v1568_v46  ;;  %511 = vmatpush.bf16.msrb.mxu0 %v1572_v54 }
  0xc4   :  { %498 = vmatpush.bf16.msra.mxu3 %v1570_v52  ;;  %524 = vmatpush.bf16.msrb.mxu1 %v1575_v58 }
 0x121   :  { %v401_v19 = vpop.f32.mrf.mxu0 }
 0x122   :  { %v402_v25 = vadd.f32 %v401_v19, %v1647_v18 }
 0x124   :  { %v414_v27 = vpop.f32.mrf.mxu1 }
 0x125   :  { %v415_v28 = vadd.f32 %v414_v27, %v402_v25 }
 0x127   :  { %v419_v33 = vmax.f32 %v415_v28, 0.0  ;;  %v375_v34 = vpop.f32.mrf.mxu2 }
 0x128   :  { %v376_v40 = vadd.f32 %v375_v34, %v1650_v32 }
 0x129   :  { %v421_v38 = vpack.c.bf16 %v419_v33, %v419_v33  ;;  %v403_v44 = vpop.f32.mrf.mxu0 }
 0x12a   :  { %v388_v42 = vpop.f32.mrf.mxu3 }
 0x12b   :  { %v389_v45 = vadd.f32 %v388_v42, %v376_v40  ;;  %443 = vmatmul.bf16.vlgmr.msrb.gmra.mxu3 %v421_v38  ;;  %469 = vmatmul.bf16.vlgmr.msra.gmra.mxu1 %v421_v38 }
 0x12c   :  { %v416_v48 = vpop.f32.mrf.mxu1  ;;  %547 = vmatpush.bf16.msrb.mxu3 %v1484_v20  ;;  %573 = vmatpush.bf16.msra.mxu1 %v1489_v26 }
 0x12d   :  { %v418_v49 = vmax.f32 %v389_v45, 0.0 }
 0x12f   :  { %v420_v51 = vpack.c.bf16 %v418_v49, %v418_v49  ;;  %v377_v55 = vpop.f32.mrf.mxu2 }
 0x130   :  { %548 = vmatpush.bf16.msrb.mxu3 %v1494_v31  ;;  %574 = vmatpush.bf16.msra.mxu1 %v1500_v39 }
 0x131   :  { %430 = vmatmul.bf16.vlgmr.msrb.gmra.mxu2 %v420_v51  ;;  %456 = vmatmul.bf16.vlgmr.msra.gmra.mxu0 %v420_v51 }
 0x132   :  { %v390_v57 = vpop.f32.mrf.mxu3  ;;  %534 = vmatpush.bf16.msrb.mxu2 %v1482_v16  ;;  %560 = vmatpush.bf16.msra.mxu0 %v1486_v21 }
 0x134   :  { %549 = vmatpush.bf16.msrb.mxu3 %v1508_v47  ;;  %575 = vmatpush.bf16.msra.mxu1 %v1514_v53 }
 0x136   :  { %535 = vmatpush.bf16.msrb.mxu2 %v1492_v30  ;;  %561 = vmatpush.bf16.msra.mxu0 %v1497_v35 }
 0x138   :  { %550 = vmatpush.bf16.msrb.mxu3 %v1520_v59  ;;  %576 = vmatpush.bf16.msra.mxu1 %v1526_v1 }
 0x13a   :  { %536 = vmatpush.bf16.msrb.mxu2 %v1504_v43  ;;  %562 = vmatpush.bf16.msra.mxu0 %v1511_v50 }
 0x13c   :  { %551 = vmatpush.bf16.msrb.mxu3 %v1532_v7  ;;  %577 = vmatpush.bf16.msra.mxu1 %v1538_v13 }
 0x13e   :  { %537 = vmatpush.bf16.msrb.mxu2 %v1517_v56  ;;  %563 = vmatpush.bf16.msra.mxu0 %v1523_v62 }
 0x140   :  { %552 = vmatpush.bf16.msrb.mxu3 %v1544_v22  ;;  %578 = vmatpush.bf16.msra.mxu1 %v1550_v24 }
 0x142   :  { %538 = vmatpush.bf16.msrb.mxu2 %v1529_v4  ;;  %564 = vmatpush.bf16.msra.mxu0 %v1535_v10 }
 0x144   :  { %553 = vmatpush.bf16.msrb.mxu3 %v1558_v36  ;;  %579 = vmatpush.bf16.msra.mxu1 %v1563_v41 }
 0x146   :  { %539 = vmatpush.bf16.msrb.mxu2 %v1541_v17  ;;  %565 = vmatpush.bf16.msra.mxu0 %v1547_v23 }
 0x148   :  { %554 = vmatpush.bf16.msrb.mxu3 %v1570_v52  ;;  %580 = vmatpush.bf16.msra.mxu1 %v1575_v58 }
 0x14a   :  { %540 = vmatpush.bf16.msrb.mxu2 %v1556_v29  ;;  %566 = vmatpush.bf16.msra.mxu0 %v1560_v37 }
 0x14e   :  { %541 = vmatpush.bf16.msrb.mxu2 %v1568_v46  ;;  %567 = vmatpush.bf16.msra.mxu0 %v1572_v54 }
 0x1a8   :  { %v470_v60 = vpop.f32.mrf.mxu1 }
 0x1ae   :  { %v444_v61 = vpop.f32.mrf.mxu3  ;;  %v457_v63 = vpop.f32.mrf.mxu0 }
 0x1af   :  { %v458_v0 = vadd.f32 %v457_v63, %v1647_v18 }
 0x1b0   :  { %v472_v2 = vpop.f32.mrf.mxu1 }
 0x1b1   :  { %v471_v3 = vadd.f32 %v470_v60, %v458_v0 }
 0x1b3   :  { %v475_v5 = vmax.f32 %v471_v3, 0.0 }
 0x1b4   :  { %v431_v6 = vpop.f32.mrf.mxu2 }
 0x1b5   :  { %v477_v8 = vpack.c.bf16 %v475_v5, %v475_v5  ;;  %v432_v9 = vadd.f32 %v431_v6, %v1650_v32 }
 0x1b6   :  { %v446_v11 = vpop.f32.mrf.mxu3  ;;  %v459_v12 = vpop.f32.mrf.mxu0 }
 0x1b7   :  { %v445_v14 = vadd.f32 %v444_v61, %v432_v9  ;;  %499 = vmatmul.bf16.vlgmr.msra.gmra.mxu3 %v477_v8  ;;  %525 = vmatmul.bf16.vlgmr.msrb.gmra.mxu1 %v477_v8 }
 0x1b8   :  { %603 = vmatpush.bf16.msra.mxu3 %v1484_v20  ;;  %629 = vmatpush.bf16.msrb.mxu1 %v1489_v26 }
 0x1b9   :  { %v474_v15 = vmax.f32 %v445_v14, 0.0 }
 0x1bb   :  { %v476_v19 = vpack.c.bf16 %v474_v15, %v474_v15 }
 0x1bc   :  { %v433_v25 = vpop.f32.mrf.mxu2  ;;  %604 = vmatpush.bf16.msra.mxu3 %v1494_v31  ;;  %630 = vmatpush.bf16.msrb.mxu1 %v1500_v39 }
 0x1bd   :  { %486 = vmatmul.bf16.vlgmr.msra.gmra.mxu2 %v476_v19  ;;  %512 = vmatmul.bf16.vlgmr.msrb.gmra.mxu0 %v476_v19 }
 0x1be   :  { %590 = vmatpush.bf16.msra.mxu2 %v1482_v16  ;;  %616 = vmatpush.bf16.msrb.mxu0 %v1486_v21 }
 0x1c0   :  { %605 = vmatpush.bf16.msra.mxu3 %v1508_v47  ;;  %631 = vmatpush.bf16.msrb.mxu1 %v1514_v53 }
 0x1c2   :  { %591 = vmatpush.bf16.msra.mxu2 %v1492_v30  ;;  %617 = vmatpush.bf16.msrb.mxu0 %v1497_v35 }
 0x1c4   :  { %606 = vmatpush.bf16.msra.mxu3 %v1520_v59  ;;  %632 = vmatpush.bf16.msrb.mxu1 %v1526_v1 }
 0x1c6   :  { %592 = vmatpush.bf16.msra.mxu2 %v1504_v43  ;;  %618 = vmatpush.bf16.msrb.mxu0 %v1511_v50 }
 0x1c8   :  { %607 = vmatpush.bf16.msra.mxu3 %v1532_v7  ;;  %633 = vmatpush.bf16.msrb.mxu1 %v1538_v13 }
 0x1ca   :  { %593 = vmatpush.bf16.msra.mxu2 %v1517_v56  ;;  %619 = vmatpush.bf16.msrb.mxu0 %v1523_v62 }
 0x1cc   :  { %608 = vmatpush.bf16.msra.mxu3 %v1544_v22  ;;  %634 = vmatpush.bf16.msrb.mxu1 %v1550_v24 }
 0x1ce   :  { %594 = vmatpush.bf16.msra.mxu2 %v1529_v4  ;;  %620 = vmatpush.bf16.msrb.mxu0 %v1535_v10 }
 0x1d0   :  { %609 = vmatpush.bf16.msra.mxu3 %v1558_v36  ;;  %635 = vmatpush.bf16.msrb.mxu1 %v1563_v41 }
 0x1d2   :  { %595 = vmatpush.bf16.msra.mxu2 %v1541_v17  ;;  %621 = vmatpush.bf16.msrb.mxu0 %v1547_v23 }
 0x1d4   :  { %610 = vmatpush.bf16.msra.mxu3 %v1570_v52  ;;  %636 = vmatpush.bf16.msrb.mxu1 %v1575_v58 }
 0x1d6   :  { %596 = vmatpush.bf16.msra.mxu2 %v1556_v29  ;;  %622 = vmatpush.bf16.msrb.mxu0 %v1560_v37 }
 0x1da   :  { %597 = vmatpush.bf16.msra.mxu2 %v1568_v46  ;;  %623 = vmatpush.bf16.msrb.mxu0 %v1572_v54 }
 0x234   :  { %v526_v27 = vpop.f32.mrf.mxu1 }
 0x23a   :  { %v500_v28 = vpop.f32.mrf.mxu3  ;;  %v513_v33 = vpop.f32.mrf.mxu0 }
 0x23b   :  { %v514_v34 = vadd.f32 %v513_v33, %v1647_v18 }
 0x23c   :  { %v528_v38 = vpop.f32.mrf.mxu1 }
 0x23d   :  { %v527_v40 = vadd.f32 %v526_v27, %v514_v34 }
 0x23f   :  { %v531_v42 = vmax.f32 %v527_v40, 0.0 }
 0x240   :  { %v487_v44 = vpop.f32.mrf.mxu2 }
 0x241   :  { %v533_v45 = vpack.c.bf16 %v531_v42, %v531_v42  ;;  %v488_v48 = vadd.f32 %v487_v44, %v1650_v32 }
 0x242   :  { %v502_v49 = vpop.f32.mrf.mxu3  ;;  %v515_v51 = vpop.f32.mrf.mxu0 }
 0x243   :  { %v501_v55 = vadd.f32 %v500_v28, %v488_v48  ;;  %555 = vmatmul.bf16.vlgmr.msrb.gmra.mxu3 %v533_v45  ;;  %581 = vmatmul.bf16.vlgmr.msra.gmra.mxu1 %v533_v45 }
 0x244   :  { %659 = vmatpush.bf16.msrb.mxu3 %v1484_v20  ;;  %685 = vmatpush.bf16.msra.mxu1 %v1489_v26 }
 0x245   :  { %v530_v57 = vmax.f32 %v501_v55, 0.0 }
 0x247   :  { %v532_v60 = vpack.c.bf16 %v530_v57, %v530_v57 }
 0x248   :  { %v489_v61 = vpop.f32.mrf.mxu2  ;;  %660 = vmatpush.bf16.msrb.mxu3 %v1494_v31  ;;  %686 = vmatpush.bf16.msra.mxu1 %v1500_v39 }
 0x249   :  { %542 = vmatmul.bf16.vlgmr.msrb.gmra.mxu2 %v532_v60  ;;  %568 = vmatmul.bf16.vlgmr.msra.gmra.mxu0 %v532_v60 }
 0x24a   :  { %646 = vmatpush.bf16.msrb.mxu2 %v1482_v16  ;;  %672 = vmatpush.bf16.msra.mxu0 %v1486_v21 }
 0x24c   :  { %661 = vmatpush.bf16.msrb.mxu3 %v1508_v47  ;;  %687 = vmatpush.bf16.msra.mxu1 %v1514_v53 }
 0x24e   :  { %647 = vmatpush.bf16.msrb.mxu2 %v1492_v30  ;;  %673 = vmatpush.bf16.msra.mxu0 %v1497_v35 }
 0x250   :  { %662 = vmatpush.bf16.msrb.mxu3 %v1520_v59  ;;  %688 = vmatpush.bf16.msra.mxu1 %v1526_v1 }
 0x252   :  { %648 = vmatpush.bf16.msrb.mxu2 %v1504_v43  ;;  %674 = vmatpush.bf16.msra.mxu0 %v1511_v50 }
 0x254   :  { %663 = vmatpush.bf16.msrb.mxu3 %v1532_v7  ;;  %689 = vmatpush.bf16.msra.mxu1 %v1538_v13 }
 0x256   :  { %649 = vmatpush.bf16.msrb.mxu2 %v1517_v56  ;;  %675 = vmatpush.bf16.msra.mxu0 %v1523_v62 }
 0x258   :  { %664 = vmatpush.bf16.msrb.mxu3 %v1544_v22  ;;  %690 = vmatpush.bf16.msra.mxu1 %v1550_v24 }
 0x25a   :  { %650 = vmatpush.bf16.msrb.mxu2 %v1529_v4  ;;  %676 = vmatpush.bf16.msra.mxu0 %v1535_v10 }
 0x25c   :  { %665 = vmatpush.bf16.msrb.mxu3 %v1558_v36  ;;  %691 = vmatpush.bf16.msra.mxu1 %v1563_v41 }
 0x25e   :  { %651 = vmatpush.bf16.msrb.mxu2 %v1541_v17  ;;  %677 = vmatpush.bf16.msra.mxu0 %v1547_v23 }
 0x260   :  { %666 = vmatpush.bf16.msrb.mxu3 %v1570_v52  ;;  %692 = vmatpush.bf16.msra.mxu1 %v1575_v58 }
 0x262   :  { %652 = vmatpush.bf16.msrb.mxu2 %v1556_v29  ;;  %678 = vmatpush.bf16.msra.mxu0 %v1560_v37 }
 0x266   :  { %653 = vmatpush.bf16.msrb.mxu2 %v1568_v46  ;;  %679 = vmatpush.bf16.msra.mxu0 %v1572_v54 }
 0x2c0   :  { %v582_v63 = vpop.f32.mrf.mxu1 }
 0x2c6   :  { %v556_v0 = vpop.f32.mrf.mxu3  ;;  %v569_v2 = vpop.f32.mrf.mxu0 }
 0x2c7   :  { %v570_v3 = vadd.f32 %v569_v2, %v1647_v18 }
 0x2c8   :  { %v584_v5 = vpop.f32.mrf.mxu1 }
 0x2c9   :  { %v583_v6 = vadd.f32 %v582_v63, %v570_v3 }
 0x2cb   :  { %v587_v8 = vmax.f32 %v583_v6, 0.0 }
 0x2cc   :  { %v543_v9 = vpop.f32.mrf.mxu2 }
 0x2cd   :  { %v589_v11 = vpack.c.bf16 %v587_v8, %v587_v8  ;;  %v544_v12 = vadd.f32 %v543_v9, %v1650_v32 }
 0x2ce   :  { %v558_v14 = vpop.f32.mrf.mxu3  ;;  %v571_v15 = vpop.f32.mrf.mxu0 }
 0x2cf   :  { %v557_v19 = vadd.f32 %v556_v0, %v544_v12  ;;  %611 = vmatmul.bf16.vlgmr.msra.gmra.mxu3 %v589_v11  ;;  %637 = vmatmul.bf16.vlgmr.msrb.gmra.mxu1 %v589_v11  ;;  %v1249_v12 = vld [vmem:[#allocation10 + $0x58] sm:$0xff]  ;;  %v1242_v14 = vld [vmem:[#allocation10 + $0x20] sm:$0xff]  ;;  %v1248_v15 = vld [vmem:[#allocation10 + $0x50] sm:$0xff] }
 0x2d0   :  { %715 = vmatpush.bf16.msra.mxu3 %v1484_v20  ;;  %741 = vmatpush.bf16.msrb.mxu1 %v1489_v26 }
 0x2d1   :  { %v586_v25 = vmax.f32 %v557_v19, 0.0  ;;  %v1241_v19 = vld [vmem:[#allocation10 + $0x18] sm:$0xff] }
 0x2d3   :  { %v588_v27 = vpack.c.bf16 %v586_v25, %v586_v25  ;;  %v1247_v25 = vld [vmem:[#allocation10 + $0x48] sm:$0xff] }
 0x2d4   :  { %v545_v28 = vpop.f32.mrf.mxu2  ;;  %716 = vmatpush.bf16.msra.mxu3 %v1494_v31  ;;  %742 = vmatpush.bf16.msrb.mxu1 %v1500_v39 }
 0x2d5   :  { %598 = vmatmul.bf16.vlgmr.msra.gmra.mxu2 %v588_v27  ;;  %624 = vmatmul.bf16.vlgmr.msrb.gmra.mxu0 %v588_v27  ;;  %v1240_v27 = vld [vmem:[#allocation10 + $0x10] sm:$0xff]  ;;  %v1246_v28 = vld [vmem:[#allocation10 + $0x40] sm:$0xff] }
 0x2d6   :  { %702 = vmatpush.bf16.msra.mxu2 %v1482_v16  ;;  %728 = vmatpush.bf16.msrb.mxu0 %v1486_v21 }
 0x2d8   :  { %717 = vmatpush.bf16.msra.mxu3 %v1508_v47  ;;  %743 = vmatpush.bf16.msrb.mxu1 %v1514_v53 }
 0x2da   :  { %703 = vmatpush.bf16.msra.mxu2 %v1492_v30  ;;  %729 = vmatpush.bf16.msrb.mxu0 %v1497_v35 }
 0x2dc   :  { %718 = vmatpush.bf16.msra.mxu3 %v1520_v59  ;;  %744 = vmatpush.bf16.msrb.mxu1 %v1526_v1 }
 0x2de   :  { %704 = vmatpush.bf16.msra.mxu2 %v1504_v43  ;;  %730 = vmatpush.bf16.msrb.mxu0 %v1511_v50 }
 0x2e0   :  { %719 = vmatpush.bf16.msra.mxu3 %v1532_v7  ;;  %745 = vmatpush.bf16.msrb.mxu1 %v1538_v13 }
 0x2e2   :  { %705 = vmatpush.bf16.msra.mxu2 %v1517_v56  ;;  %731 = vmatpush.bf16.msrb.mxu0 %v1523_v62 }
 0x2e4   :  { %720 = vmatpush.bf16.msra.mxu3 %v1544_v22  ;;  %746 = vmatpush.bf16.msrb.mxu1 %v1550_v24 }
 0x2e6   :  { %706 = vmatpush.bf16.msra.mxu2 %v1529_v4  ;;  %732 = vmatpush.bf16.msrb.mxu0 %v1535_v10 }
 0x2e8   :  { %721 = vmatpush.bf16.msra.mxu3 %v1558_v36  ;;  %747 = vmatpush.bf16.msrb.mxu1 %v1563_v41 }
 0x2ea   :  { %707 = vmatpush.bf16.msra.mxu2 %v1541_v17  ;;  %733 = vmatpush.bf16.msrb.mxu0 %v1547_v23 }
 0x2ec   :  { %722 = vmatpush.bf16.msra.mxu3 %v1570_v52  ;;  %748 = vmatpush.bf16.msrb.mxu1 %v1575_v58 }
 0x2ee   :  { %708 = vmatpush.bf16.msra.mxu2 %v1556_v29  ;;  %734 = vmatpush.bf16.msrb.mxu0 %v1560_v37 }
 0x2f2   :  { %709 = vmatpush.bf16.msra.mxu2 %v1568_v46  ;;  %735 = vmatpush.bf16.msrb.mxu0 %v1572_v54 }
 0x34c   :  { %v638_v33 = vpop.f32.mrf.mxu1 }
 0x352   :  { %v612_v34 = vpop.f32.mrf.mxu3  ;;  %v625_v38 = vpop.f32.mrf.mxu0 }
 0x353   :  { %v626_v40 = vadd.f32 %v625_v38, %v1647_v18 }
 0x354   :  { %v640_v42 = vpop.f32.mrf.mxu1 }
 0x355   :  { %v639_v44 = vadd.f32 %v638_v33, %v626_v40  ;;  %v1239_v33 = vld [vmem:[#allocation10 + $0x8] sm:$0xff] }
 0x357   :  { %v643_v45 = vmax.f32 %v639_v44, 0.0 }
 0x358   :  { %v599_v48 = vpop.f32.mrf.mxu2 }
 0x359   :  { %v645_v49 = vpack.c.bf16 %v643_v45, %v643_v45  ;;  %v600_v51 = vadd.f32 %v599_v48, %v1650_v32 }
 0x35a   :  { %v614_v55 = vpop.f32.mrf.mxu3  ;;  %v627_v57 = vpop.f32.mrf.mxu0 }
 0x35b   :  { %v613_v60 = vadd.f32 %v612_v34, %v600_v51  ;;  %667 = vmatmul.bf16.vlgmr.msrb.gmra.mxu3 %v645_v49  ;;  %693 = vmatmul.bf16.vlgmr.msra.gmra.mxu1 %v645_v49  ;;  %v1238_v34 = vld [vmem:[#allocation10] sm:$0xff] }
 0x35c   :  { %771 = vmatpush.bf16.msrb.mxu3 %v1484_v20  ;;  %797 = vmatpush.bf16.msra.mxu1 %v1489_v26 }
 0x35d   :  { %v642_v61 = vmax.f32 %v613_v60, 0.0 }
 0x35f   :  { %v644_v63 = vpack.c.bf16 %v642_v61, %v642_v61 }
 0x360   :  { %v601_v0 = vpop.f32.mrf.mxu2  ;;  %772 = vmatpush.bf16.msrb.mxu3 %v1494_v31  ;;  %798 = vmatpush.bf16.msra.mxu1 %v1500_v39 }
 0x361   :  { %654 = vmatmul.bf16.vlgmr.msrb.gmra.mxu2 %v644_v63  ;;  %680 = vmatmul.bf16.vlgmr.msra.gmra.mxu0 %v644_v63 }
 0x362   :  { %758 = vmatpush.bf16.msrb.mxu2 %v1482_v16  ;;  %784 = vmatpush.bf16.msra.mxu0 %v1486_v21 }
 0x364   :  { %773 = vmatpush.bf16.msrb.mxu3 %v1508_v47  ;;  %799 = vmatpush.bf16.msra.mxu1 %v1514_v53 }
 0x366   :  { %759 = vmatpush.bf16.msrb.mxu2 %v1492_v30  ;;  %785 = vmatpush.bf16.msra.mxu0 %v1497_v35 }
 0x368   :  { %774 = vmatpush.bf16.msrb.mxu3 %v1520_v59  ;;  %800 = vmatpush.bf16.msra.mxu1 %v1526_v1 }
 0x36a   :  { %760 = vmatpush.bf16.msrb.mxu2 %v1504_v43  ;;  %786 = vmatpush.bf16.msra.mxu0 %v1511_v50 }
 0x36c   :  { %775 = vmatpush.bf16.msrb.mxu3 %v1532_v7  ;;  %801 = vmatpush.bf16.msra.mxu1 %v1538_v13  ;;  %v1245_v7 = vld [vmem:[#allocation10 + $0x38] sm:$0xff]  ;;  %v1244_v13 = vld [vmem:[#allocation10 + $0x30] sm:$0xff] }
 0x36e   :  { %761 = vmatpush.bf16.msrb.mxu2 %v1517_v56  ;;  %787 = vmatpush.bf16.msra.mxu0 %v1523_v62 }
 0x370   :  { %776 = vmatpush.bf16.msrb.mxu3 %v1544_v22  ;;  %802 = vmatpush.bf16.msra.mxu1 %v1550_v24  ;;  %v1243_v22 = vld [vmem:[#allocation10 + $0x28] sm:$0xff] }
 0x372   :  { %762 = vmatpush.bf16.msrb.mxu2 %v1529_v4  ;;  %788 = vmatpush.bf16.msra.mxu0 %v1535_v10  ;;  %v1253_v4 = vld [vmem:[#allocation10 + $0x78] sm:$0xff]  ;;  %v1252_v10 = vld [vmem:[#allocation10 + $0x70] sm:$0xff] }
 0x374   :  { %777 = vmatpush.bf16.msrb.mxu3 %v1558_v36  ;;  %803 = vmatpush.bf16.msra.mxu1 %v1563_v41 }
 0x376   :  { %763 = vmatpush.bf16.msrb.mxu2 %v1541_v17  ;;  %789 = vmatpush.bf16.msra.mxu0 %v1547_v23  ;;  %v1251_v17 = vld [vmem:[#allocation10 + $0x68] sm:$0xff]  ;;  %v1250_v23 = vld [vmem:[#allocation10 + $0x60] sm:$0xff] }
 0x378   :  { %778 = vmatpush.bf16.msrb.mxu3 %v1570_v52  ;;  %804 = vmatpush.bf16.msra.mxu1 %v1575_v58 }
 0x37a   :  { %764 = vmatpush.bf16.msrb.mxu2 %v1556_v29  ;;  %790 = vmatpush.bf16.msra.mxu0 %v1560_v37 }
 0x37e   :  { %765 = vmatpush.bf16.msrb.mxu2 %v1568_v46  ;;  %791 = vmatpush.bf16.msra.mxu0 %v1572_v54 }
 0x3d8   :  { %v694_v16 = vpop.f32.mrf.mxu1 }
 0x3de   :  { %v668_v20 = vpop.f32.mrf.mxu3  ;;  %v681_v21 = vpop.f32.mrf.mxu0 }
 0x3df   :  { %v682_v26 = vadd.f32 %v681_v21, %v1647_v18 }
 0x3e0   :  { %v696_v30 = vpop.f32.mrf.mxu1 }
 0x3e1   :  { %v695_v31 = vadd.f32 %v694_v16, %v682_v26 }
 0x3e3   :  { %v699_v35 = vmax.f32 %v695_v31, 0.0 }
 0x3e4   :  { %v655_v39 = vpop.f32.mrf.mxu2 }
 0x3e5   :  { %v701_v43 = vpack.c.bf16 %v699_v35, %v699_v35  ;;  %v656_v47 = vadd.f32 %v655_v39, %v1650_v32 }
 0x3e6   :  { %v670_v50 = vpop.f32.mrf.mxu3  ;;  %v683_v53 = vpop.f32.mrf.mxu0 }
 0x3e7   :  { %v669_v56 = vadd.f32 %v668_v20, %v656_v47  ;;  %723 = vmatmul.bf16.vlgmr.msra.gmra.mxu3 %v701_v43  ;;  %749 = vmatmul.bf16.vlgmr.msrb.gmra.mxu1 %v701_v43 }
 0x3e8   :  { %959 = vmatpush.bf16.msra.mxu3 %v1253_v4 }
 0x3e9   :  { %v698_v59 = vmax.f32 %v669_v56, 0.0 }
 0x3eb   :  { %v700_v62 = vpack.c.bf16 %v698_v59, %v698_v59 }
 0x3ec   :  { %v657_v1 = vpop.f32.mrf.mxu2  ;;  %960 = vmatpush.bf16.msra.mxu3 %v1252_v10 }
 0x3ed   :  { %710 = vmatmul.bf16.vlgmr.msra.gmra.mxu2 %v700_v62  ;;  %736 = vmatmul.bf16.vlgmr.msrb.gmra.mxu0 %v700_v62 }
 0x3ee   :  { %946 = vmatpush.bf16.msra.mxu2 %v1245_v7 }
 0x3f0   :  { %961 = vmatpush.bf16.msra.mxu3 %v1251_v17 }
 0x3f2   :  { %947 = vmatpush.bf16.msra.mxu2 %v1244_v13 }
 0x3f4   :  { %962 = vmatpush.bf16.msra.mxu3 %v1250_v23 }
 0x3f6   :  { %948 = vmatpush.bf16.msra.mxu2 %v1243_v22 }
 0x3f8   :  { %963 = vmatpush.bf16.msra.mxu3 %v1249_v12 }
 0x3fa   :  { %949 = vmatpush.bf16.msra.mxu2 %v1242_v14 }
 0x3fc   :  { %964 = vmatpush.bf16.msra.mxu3 %v1248_v15 }
 0x3fe   :  { %950 = vmatpush.bf16.msra.mxu2 %v1241_v19 }
 0x400   :  { %965 = vmatpush.bf16.msra.mxu3 %v1247_v25 }
 0x402   :  { %951 = vmatpush.bf16.msra.mxu2 %v1240_v27 }
 0x404   :  { %966 = vmatpush.bf16.msra.mxu3 %v1246_v28 }
 0x406   :  { %952 = vmatpush.bf16.msra.mxu2 %v1239_v33 }
 0x40a   :  { %953 = vmatpush.bf16.msra.mxu2 %v1238_v34 }
 0x464   :  { %v750_v24 = vpop.f32.mrf.mxu1 }
 0x46a   :  { %v724_v29 = vpop.f32.mrf.mxu3  ;;  %v737_v36 = vpop.f32.mrf.mxu0 }
 0x46b   :  { %v738_v37 = vadd.f32 %v737_v36, %v1647_v18 }
 0x46c   :  { %v752_v41 = vpop.f32.mrf.mxu1 }
 0x46d   :  { %v751_v46 = vadd.f32 %v750_v24, %v738_v37 }
 0x46f   :  { %v755_v52 = vmax.f32 %v751_v46, 0.0 }
 0x470   :  { %v711_v54 = vpop.f32.mrf.mxu2 }
 0x471   :  { %v757_v58 = vpack.c.bf16 %v755_v52, %v755_v52  ;;  %v712_v2 = vadd.f32 %v711_v54, %v1650_v32 }
 0x472   :  { %v726_v3 = vpop.f32.mrf.mxu3  ;;  %v739_v5 = vpop.f32.mrf.mxu0 }
 0x473   :  { %v725_v6 = vadd.f32 %v724_v29, %v712_v2  ;;  %779 = vmatmul.bf16.vlgmr.msrb.gmra.mxu3 %v757_v58  ;;  %805 = vmatmul.bf16.vlgmr.msra.gmra.mxu1 %v757_v58 }
 0x475   :  { %v754_v8 = vmax.f32 %v725_v6, 0.0 }
 0x477   :  { %v756_v9 = vpack.c.bf16 %v754_v8, %v754_v8 }
 0x478   :  { %v713_v11 = vpop.f32.mrf.mxu2 }
 0x479   :  { %766 = vmatmul.bf16.vlgmr.msrb.gmra.mxu2 %v756_v9  ;;  %792 = vmatmul.bf16.vlgmr.msra.gmra.mxu0 %v756_v9 }
 0x4f0   :  { %v806_v38 = vpop.f32.mrf.mxu1 }
 0x4f6   :  { %v780_v40 = vpop.f32.mrf.mxu3  ;;  %v793_v42 = vpop.f32.mrf.mxu0 }
 0x4f7   :  { %v794_v44 = vadd.f32 %v793_v42, %v1647_v18  ;;  %v1264_v18 = vld [vmem:[%s1839_s6] ss:$0 sm:$0xff] }
 0x4f8   :  { %v808_v45 = vpop.f32.mrf.mxu1 }
 0x4f9   :  { %v807_v48 = vadd.f32 %v806_v38, %v794_v44 }
 0x4fb   :  { %v811_v49 = vmax.f32 %v807_v48, 0.0 }
 0x4fc   :  { %v767_v51 = vpop.f32.mrf.mxu2 }
 0x4fd   :  { %v813_v55 = vpack.c.bf16 %v811_v49, %v811_v49  ;;  %v768_v57 = vadd.f32 %v767_v51, %v1650_v32 }
 0x4fe   :  { %v782_v60 = vpop.f32.mrf.mxu3  ;;  %v795_v61 = vpop.f32.mrf.mxu0 }
 0x4ff   :  { %v781_v63 = vadd.f32 %v780_v40, %v768_v57  ;;  %967 = vmatmul.bf16.vlgmr.msra.gmra.mxu3 %v813_v55 }
 0x501   :  { %v810_v0 = vmax.f32 %v781_v63, 0.0 }
 0x503   :  { %v812_v16 = vpack.c.bf16 %v810_v0, %v810_v0 }
 0x504   :  { %v769_v20 = vpop.f32.mrf.mxu2 }
 0x505   :  { %954 = vmatmul.bf16.vlgmr.msra.gmra.mxu2 %v812_v16 }
 0x582   :  { %v968_v21 = vpop.f32.mrf.mxu3 }
 0x588   :  { %v955_v26 = vpop.f32.mrf.mxu2 }
 0x589   :  { %v956_v32 = vadd.f32 %v1264_v18, %v955_v26 }
 0x58a   :  { %v970_v30 = vpop.f32.mrf.mxu3 }
 0x58b   :  { %v969_v31 = vadd.f32 %v968_v21, %v956_v32 }
 0x58d   :  { %972 = vst [vmem:[#allocation11] sm:$0xff] %v969_v31 }
 0x58e   :  { %983 = dma.vmem_to_hbm [thread:$0]  %s979_s29, 128, %s981_s9, [#allocation4]  }
 0x590   :  { %v957_v35 = vpop.f32.mrf.mxu2 }
 0x591   :  { %1415 = dma.done.wait [#allocation4], 128  }
 0x592   :  { %1416 = vsyncadd [#allocation4], 4294967168 }
 0x593   :  { %988 = vsyncpa [#allocation3], 1 }
 0x594   :  { %989 = vsyncpa [#allocation6], 1 }
 0x595   :  { %990 = vsyncpa [#allocation9], 1 }
 0x596   :  { %991 = vsyncpa [#allocation4], 1 }

</bundles_post_ra>
